<compile_context>
chip_gen: v5e
topology: v5e:2x2
jax: 0.10.0
libtpu: 0.0.40
codegen_flags: <defaults>
</compile_context>

<pallas_src>
import math
import jax
import jax.numpy as jnp
from jax.experimental import pallas as pl
from jax.experimental.pallas import tpu as pltpu


def _ceil_to(a: int, m: int) -> int:
    return (a + m - 1) // m * m


def _vmem_budget_bytes() -> int:
    """75% of per-core VMEM (48 MiB on v7x, 96 MiB on v5e/v6e); conservative fallback."""
    try:
        cap = int(pltpu.get_tpu_info().vmem_capacity_bytes)
    except Exception:
        cap = 64 << 20          # conservative: v7x per-TensorCore VMEM
    return max(32 << 20, cap * 3 // 4)


def mlp_kernel(x_ref, m_ref, w1_ref, b1_ref, w2_ref, b2_ref, w3_ref, b3_ref, o_ref):
    # x_ref : (TM, H)  f32        m_ref / o_ref : (1, TM) f32
    # w1_ref: (H, 64)  bf16       b1_ref: (1, 64) f32
    # w2_ref: (64, 32) bf16       b2_ref: (1, 32) f32
    # w3_ref: (1, 32)  f32        b3_ref: (1, 1)  f32
    # Cast to bf16 in-kernel (cheap VPU work hidden under the HBM stream); the
    # matmuls accumulate in f32 and ReLU/sigmoid stay in f32 (v5e has no bf16 VPU).
    x = x_ref[...].astype(jnp.bfloat16)
    h1 = jnp.dot(x, w1_ref[...], preferred_element_type=jnp.float32) + b1_ref[...]
    h1 = jnp.maximum(h1, 0.0)                                   # ReLU (f32)
    h2 = jnp.dot(h1.astype(jnp.bfloat16), w2_ref[...],
                 preferred_element_type=jnp.float32) + b2_ref[...]
    h2 = jnp.maximum(h2, 0.0)                                   # ReLU (f32)
    # Layer 3 (32 -> 1): (1,32) . (TM,32) contracted over the 32-dim on the MXU
    # gives a lane-dense (1, TM) result directly (no transpose / relayout of h2).
    h3 = jax.lax.dot_general(
        w3_ref[...], h2,
        dimension_numbers=(((1,), (1,)), ((), ())),
        preferred_element_type=jnp.float32) + b3_ref[...]
    o_ref[...] = jax.nn.sigmoid(h3) * m_ref[...]                # Sigmoid * mask


def mlp_forward(x, mask_cls, params):
    """x: [B, S, H] float32, mask_cls: [B, S]. Returns sigmoid(MLP(x)) * mask, [B, S]."""
    B, S, H = x.shape
    N = B * S
    w1t, b1, w2t, b2, w3, b3 = params
    w1b = w1t.astype(jnp.bfloat16)      # tiny, reused every step -> pre-cast is fine
    w2b = w2t.astype(jnp.bfloat16)

    # ---- tile sizing from an explicit per-row VMEM byte budget -----------------
    #   x f32 (2 pipeline bufs)            : 8*H
    #   in-kernel bf16 copy of x           : 2*H
    #   h1 f32 / h1 bf16 / h2 f32          : 256 + 128 + 128
    #   (1, TM) rows pad to 8 sublanes: mask(2) + out(2) + h3/temps(~2): 6*32
    #   compiler temporaries slack         : 128
    per_row = 10 * H + 256 + 128 + 128 + 6 * 32 + 128
    # double-buffered bf16 weight mats + bias/scalar pads + Mosaic internal scratch
    fixed = 2 * 2 * (H * 64 + 64 * 32) + (1 << 20) + (6 << 20)

    vmem_budget = _vmem_budget_bytes()
    n128 = _ceil_to(N, 128)
    tile_m = max(128, (vmem_budget - fixed) // per_row // 128 * 128)
    tile_m = int(min(tile_m, n128))          # don't tile past the (128-aligned) row count
    num_tiles = pl.cdiv(N, tile_m)
    N_out = num_tiles * tile_m

    # ---- operands ---------------------------------------------------------------
    x2 = x.reshape(N, H)                     # free (view)
    if tile_m > N:
        # Single tile larger than the array: pad so block_shape <= array shape.
        # Only happens for small N, so this copy is trivial.
        x2 = jnp.pad(x2, ((0, tile_m - N), (0, 0)))
    # Otherwise the ragged tail (N % tile_m != 0) is a partial Pallas edge block:
    # its out-of-bounds rows produce garbage outputs that are sliced off below.
    m2 = mask_cls.reshape(N).astype(jnp.float32)
    if N_out != N:
        m2 = jnp.pad(m2, (0, N_out - N))     # cheap: 4 B/row, not the H*4 B x stream
    m2 = m2.reshape(1, N_out)                # lane-dense mask row

    # ---- VMEM request + cost hint -------------------------------------------------
    vmem_limit = int(min(vmem_budget, max(32 << 20, tile_m * per_row + fixed)))
    cost = pl.CostEstimate(
        flops=2 * N_out * (H * 64 + 64 * 32 + 32),
        transcendentals=N_out,                           # one sigmoid per row
        bytes_accessed=N_out * H * 4 + 2 * N_out * 4
        + (H * 64 + 64 * 32) * 2 + (64 + 32 + 32 + 1) * 4,
    )

    # ---- BlockSpecs ----------------------------------------------------------------
    full2d = lambda a: pl.BlockSpec(a.shape, lambda i: (0, 0))   # resident weights/biases

    out = pl.pallas_call(
        mlp_kernel,
        out_shape=jax.ShapeDtypeStruct((1, N_out), jnp.float32),
        grid=(num_tiles,),
        in_specs=[
            pl.BlockSpec((tile_m, H), lambda i: (i, 0)),   # x rows   (tile_m, H) f32
            pl.BlockSpec((1, tile_m), lambda i: (0, i)),   # mask row (1, tile_m) f32
            full2d(w1b), full2d(b1),
            full2d(w2b), full2d(b2),
            full2d(w3), full2d(b3),
        ],
        out_specs=pl.BlockSpec((1, tile_m), lambda i: (0, i)),
        compiler_params=pltpu.CompilerParams(
            dimension_semantics=("parallel",),
            vmem_limit_bytes=vmem_limit,
        ),
        cost_estimate=cost,
    )(x2, m2, w1b, b1, w2b, b2, w3, b3)

    return out[0, :N].reshape(B, S)


def init_params(hidden_size, key):
    """Deterministic f32 init mirroring the PyTorch module's __init__ distributions."""
    k = jax.random.split(key, 6)

    def kaiming_uniform(key, out_f, in_f):
        bound = math.sqrt(6.0 / in_f)                 # gain=sqrt(2), relu
        return jax.random.uniform(key, (out_f, in_f), jnp.float32, -bound, bound)

    def xavier_uniform(key, out_f, in_f):
        bound = math.sqrt(6.0 / (in_f + out_f))
        return jax.random.uniform(key, (out_f, in_f), jnp.float32, -bound, bound)

    def linear_bias(key, out_f, in_f):
        bound = 1.0 / math.sqrt(in_f)
        return jax.random.uniform(key, (1, out_f), jnp.float32, -bound, bound)

    w1 = kaiming_uniform(k[0], 64, hidden_size)
    b1 = linear_bias(k[1], 64, hidden_size)
    w2 = kaiming_uniform(k[2], 32, 64)
    b2 = linear_bias(k[3], 32, 64)
    w3 = xavier_uniform(k[4], 1, 32)                  # kept as (1, 32) for the MXU form
    b3 = linear_bias(k[5], 1, 32)

    # store the big weights transposed as [in, out] so the hot path is row-major matmuls
    return (w1.T, b1, w2.T, b2, w3, b3)


def mlp_reference(x, mask_cls, params):
    w1t, b1, w2t, b2, w3, b3 = params
    h = jnp.maximum(x @ w1t + b1[0], 0.0)
    h = jnp.maximum(h @ w2t + b2[0], 0.0)
    z = (h @ w3.T + b3[0]).squeeze(-1)
    return jax.nn.sigmoid(z) * mask_cls.astype(jnp.float32)


if __name__ == "__main__":
    key = jax.random.PRNGKey(0)
    k_x, k_m, k_p = jax.random.split(key, 3)

    B, S, H = 2, 8, 32                       # hidden_size = 32
    x = jax.random.normal(k_x, (B, S, H), jnp.float32)
    mask_cls = (jax.random.uniform(k_m, (B, S)) > 0.3).astype(jnp.int32)

    params = init_params(H, k_p)

    out = mlp_forward(x, mask_cls, params)
    out = jax.block_until_ready(out)

    ref = mlp_reference(x, mask_cls, params)
    assert out.shape == (B, S)
    # bf16 matmul inputs (f32 accumulation) -> compare against the f32 reference
    # with a bf16-level tolerance.
    assert jnp.allclose(out, ref, atol=2e-2, rtol=2e-2), float(jnp.max(jnp.abs(out - ref)))

    print("KERNEL_OK")
</pallas_src>

<mosaic_0001>
module attributes {stable_mosaic.version = 11 : i64} {
  func.func @mlp_kernel(%arg0: i32, %arg1: memref<128x32xf32, #tpu.memory_space<vmem>>, %arg2: memref<1x128xf32, #tpu.memory_space<vmem>>, %arg3: memref<32x64xbf16, #tpu.memory_space<vmem>>, %arg4: memref<1x64xf32, #tpu.memory_space<vmem>>, %arg5: memref<64x32xbf16, #tpu.memory_space<vmem>>, %arg6: memref<1x32xf32, #tpu.memory_space<vmem>>, %arg7: memref<1x32xf32, #tpu.memory_space<vmem>>, %arg8: memref<1x1xf32, #tpu.memory_space<vmem>>, %arg9: memref<1x128xf32, #tpu.memory_space<vmem>>) attributes {dimension_semantics = [#tpu.dimension_semantics<parallel>], iteration_bounds = array<i64: 1>, scalar_prefetch = 0 : i64, scratch_operands = 0 : i64, tpu.core_type = #tpu.core_type<tc>, window_params = [{transform_indices = @transform_0, window_bounds = array<i64: 128, 32>}, {transform_indices = @transform_1, window_bounds = array<i64: 1, 128>}, {pipeline_mode = #tpu.pipeline_mode<synchronous>, transform_indices = @transform_2, window_bounds = array<i64: 32, 64>}, {pipeline_mode = #tpu.pipeline_mode<synchronous>, transform_indices = @transform_3, window_bounds = array<i64: 1, 64>}, {pipeline_mode = #tpu.pipeline_mode<synchronous>, transform_indices = @transform_4, window_bounds = array<i64: 64, 32>}, {pipeline_mode = #tpu.pipeline_mode<synchronous>, transform_indices = @transform_5, window_bounds = array<i64: 1, 32>}, {pipeline_mode = #tpu.pipeline_mode<synchronous>, transform_indices = @transform_6, window_bounds = array<i64: 1, 32>}, {pipeline_mode = #tpu.pipeline_mode<synchronous>, transform_indices = @transform_7, window_bounds = array<i64: 1, 1>}, {transform_indices = @transform_8, window_bounds = array<i64: 1, 128>}]} {
    %c0 = arith.constant 0 : index
    %c0_0 = arith.constant 0 : index
    %0 = vector.load %arg1[%c0, %c0_0] : memref<128x32xf32, #tpu.memory_space<vmem>>, vector<128x32xf32>
    %1 = arith.truncf %0 : vector<128x32xf32> to vector<128x32xbf16>
    %c0_1 = arith.constant 0 : index
    %c0_2 = arith.constant 0 : index
    %2 = vector.load %arg3[%c0_1, %c0_2] : memref<32x64xbf16, #tpu.memory_space<vmem>>, vector<32x64xbf16>
    %cst = arith.constant dense<0.000000e+00> : vector<128x64xf32>
    %3 = tpu.matmul %1, %2, %cst {dimension_numbers = #tpu.dot_dimension_numbers<[1], [0], [0], [1], [0, 0, 1, 1], [], []>} : vector<128x32xbf16>, vector<32x64xbf16>, vector<128x64xf32> -> vector<128x64xf32>
    %c0_3 = arith.constant 0 : index
    %c0_4 = arith.constant 0 : index
    %4 = vector.load %arg4[%c0_3, %c0_4] : memref<1x64xf32, #tpu.memory_space<vmem>>, vector<1x64xf32>
    %5 = vector.broadcast %4 : vector<1x64xf32> to vector<128x64xf32>
    %6 = arith.addf %3, %5 : vector<128x64xf32>
    %cst_5 = arith.constant 0.000000e+00 : f32
    %7 = vector.broadcast %cst_5 : f32 to vector<128x64xf32>
    %8 = arith.maximumf %6, %7 : vector<128x64xf32>
    %9 = arith.truncf %8 : vector<128x64xf32> to vector<128x64xbf16>
    %c0_6 = arith.constant 0 : index
    %c0_7 = arith.constant 0 : index
    %10 = vector.load %arg5[%c0_6, %c0_7] : memref<64x32xbf16, #tpu.memory_space<vmem>>, vector<64x32xbf16>
    %cst_8 = arith.constant dense<0.000000e+00> : vector<128x32xf32>
    %11 = tpu.matmul %9, %10, %cst_8 {dimension_numbers = #tpu.dot_dimension_numbers<[1], [0], [0], [1], [0, 0, 1, 1], [], []>} : vector<128x64xbf16>, vector<64x32xbf16>, vector<128x32xf32> -> vector<128x32xf32>
    %c0_9 = arith.constant 0 : index
    %c0_10 = arith.constant 0 : index
    %12 = vector.load %arg6[%c0_9, %c0_10] : memref<1x32xf32, #tpu.memory_space<vmem>>, vector<1x32xf32>
    %13 = vector.broadcast %12 : vector<1x32xf32> to vector<128x32xf32>
    %14 = arith.addf %11, %13 : vector<128x32xf32>
    %cst_11 = arith.constant 0.000000e+00 : f32
    %15 = vector.broadcast %cst_11 : f32 to vector<128x32xf32>
    %16 = arith.maximumf %14, %15 : vector<128x32xf32>
    %c0_12 = arith.constant 0 : index
    %c0_13 = arith.constant 0 : index
    %17 = vector.load %arg7[%c0_12, %c0_13] : memref<1x32xf32, #tpu.memory_space<vmem>>, vector<1x32xf32>
    %cst_14 = arith.constant dense<0.000000e+00> : vector<1x128xf32>
    %18 = tpu.matmul %17, %16, %cst_14 {dimension_numbers = #tpu.dot_dimension_numbers<[1], [1], [0], [0], [0, 0, 1, 0], [], []>} : vector<1x32xf32>, vector<128x32xf32>, vector<1x128xf32> -> vector<1x128xf32>
    %c0_15 = arith.constant 0 : index
    %c0_16 = arith.constant 0 : index
    %19 = vector.load %arg8[%c0_15, %c0_16] : memref<1x1xf32, #tpu.memory_space<vmem>>, vector<1x1xf32>
    %20 = vector.broadcast %19 : vector<1x1xf32> to vector<1x128xf32>
    %21 = arith.addf %18, %20 : vector<1x128xf32>
    %22 = arith.negf %21 : vector<1x128xf32>
    %23 = math.exp %22 : vector<1x128xf32>
    %cst_17 = arith.constant 1.000000e+00 : f32
    %24 = vector.broadcast %cst_17 : f32 to vector<1x128xf32>
    %25 = arith.addf %24, %23 : vector<1x128xf32>
    %26 = arith.divf %24, %25 : vector<1x128xf32>
    %c0_18 = arith.constant 0 : index
    %c0_19 = arith.constant 0 : index
    %27 = vector.load %arg2[%c0_18, %c0_19] : memref<1x128xf32, #tpu.memory_space<vmem>>, vector<1x128xf32>
    %28 = arith.mulf %26, %27 : vector<1x128xf32>
    %c0_20 = arith.constant 0 : index
    %c0_21 = arith.constant 0 : index
    %29 = vector.load %arg9[%c0_20, %c0_21] : memref<1x128xf32, #tpu.memory_space<vmem>>, vector<1x128xf32>
    tpu.vector_store %arg9[%c0_20, %c0_21], %28 {strides = array<i32>} : memref<1x128xf32, #tpu.memory_space<vmem>>, vector<1x128xf32>,
    return
  }
  func.func @transform_0(%arg0: i32) -> (i32, i32) {
    %c0_i32 = arith.constant 0 : i32
    %c0_i32_0 = arith.constant 0 : i32
    return %arg0, %c0_i32 : i32, i32
  }
  func.func @transform_1(%arg0: i32) -> (i32, i32) {
    %c0_i32 = arith.constant 0 : i32
    %c0_i32_0 = arith.constant 0 : i32
    return %c0_i32, %arg0 : i32, i32
  }
  func.func @transform_2(%arg0: i32) -> (i32, i32) {
    %c0_i32 = arith.constant 0 : i32
    %c0_i32_0 = arith.constant 0 : i32
    %c0_i32_1 = arith.constant 0 : i32
    return %c0_i32, %c0_i32_0 : i32, i32
  }
  func.func @transform_3(%arg0: i32) -> (i32, i32) {
    %c0_i32 = arith.constant 0 : i32
    %c0_i32_0 = arith.constant 0 : i32
    %c0_i32_1 = arith.constant 0 : i32
    return %c0_i32, %c0_i32_0 : i32, i32
  }
  func.func @transform_4(%arg0: i32) -> (i32, i32) {
    %c0_i32 = arith.constant 0 : i32
    %c0_i32_0 = arith.constant 0 : i32
    %c0_i32_1 = arith.constant 0 : i32
    return %c0_i32, %c0_i32_0 : i32, i32
  }
  func.func @transform_5(%arg0: i32) -> (i32, i32) {
    %c0_i32 = arith.constant 0 : i32
    %c0_i32_0 = arith.constant 0 : i32
    %c0_i32_1 = arith.constant 0 : i32
    return %c0_i32, %c0_i32_0 : i32, i32
  }
  func.func @transform_6(%arg0: i32) -> (i32, i32) {
    %c0_i32 = arith.constant 0 : i32
    %c0_i32_0 = arith.constant 0 : i32
    %c0_i32_1 = arith.constant 0 : i32
    return %c0_i32, %c0_i32_0 : i32, i32
  }
  func.func @transform_7(%arg0: i32) -> (i32, i32) {
    %c0_i32 = arith.constant 0 : i32
    %c0_i32_0 = arith.constant 0 : i32
    %c0_i32_1 = arith.constant 0 : i32
    return %c0_i32, %c0_i32_0 : i32, i32
  }
  func.func @transform_8(%arg0: i32) -> (i32, i32) {
    %c0_i32 = arith.constant 0 : i32
    %c0_i32_0 = arith.constant 0 : i32
    return %c0_i32, %arg0 : i32, i32
  }
}

</mosaic_0001>

<bundles_post_ra>
// kernel: tpu_custom_call.1
= control target key start
LH: loop header
LB: loop body
LE: loop exit
PB: predicated region body
PF: predicated region fallthrough
CT: control target
= control target key end

     0   :  { %s693_s0 = inlined_call_operand.vmem [shape: f32[128,32], index: 0, kind: input, shape index: {}]   ;;  %s694_s1 = inlined_call_operand.vmem [shape: f32[1,128], index: 1, kind: input, shape index: {}]   ;;  %s695_s2 = inlined_call_operand.vmem [shape: bf16[32,64], index: 2, kind: input, shape index: {}]   ;;  %s696_s3 = inlined_call_operand.vmem [shape: f32[1,64], index: 3, kind: input, shape index: {}]   ;;  %s697_s4 = inlined_call_operand.vmem [shape: bf16[64,32], index: 4, kind: input, shape index: {}]   ;;  %s698_s5 = inlined_call_operand.vmem [shape: f32[1,32], index: 5, kind: input, shape index: {}]   ;;  %s699_s6 = inlined_call_operand.vmem [shape: f32[1,32], index: 6, kind: input, shape index: {}]   ;;  %s700_s7 = inlined_call_operand.<no memory space> [shape: f32[1,1], index: 7, kind: input, shape index: {}]   ;;  %s701_s8 = inlined_call_operand.hbm [shape: f32[1,128], index: 8, kind: output, shape index: {}]  }
   0x1   :  { %v13_v0 = vstv %s700_s7 }
   0x2   :  { %14 = vst [vmem:[#allocation2] sm:$0x1] %v13_v0 }
   0x3   :  { %v477_v1 = vld [vmem:[%s695_s2 + $0x8] sm:$0xff]  ;;  %v476_v2 = vld [vmem:[%s695_s2] sm:$0xff]  ;;  %v39_v5 = vld [vmem:[%s693_s0 + $0x30] sm:$0xff] }
   0x4   :  { %v33_v3 = vld [vmem:[%s693_s0] sm:$0xff]  ;;  %108 = vmatpush.bf16.msra.mxu0 %v477_v1  ;;  %482 = vmatpush.bf16.msra.mxu2 %v477_v1  ;;  %v34_v4 = vld [vmem:[%s693_s0 + $0x8] sm:$0xff]  ;;  %v40_v6 = vld [vmem:[%s693_s0 + $0x38] sm:$0xff] }
   0x5   :  { %483 = vmatpush.bf16.msra.mxu3 %v477_v1 }
   0x6   :  { %15 = vsyncpa [#allocation4], 0  ;;  %v49_v7 = vpack.c.bf16 %v34_v4, %v33_v3  ;;  %v52_v8 = vpack.c.bf16 %v40_v6, %v39_v5  ;;  %vm77_vm0 = vcmask 261120   ;;  %v35_v9 = vld [vmem:[%s693_s0 + $0x10] sm:$0xff]  ;;  %v36_v10 = vld [vmem:[%s693_s0 + $0x18] sm:$0xff]  ;;  %vm211_vm1 = vcmask 523264  }
   0x7   :  { %v41_v11 = vld [vmem:[%s693_s0 + $0x40] sm:$0xff]  ;;  %v42_v12 = vld [vmem:[%s693_s0 + $0x48] sm:$0xff]  ;;  %v50_v13 = vpack.c.bf16 %v36_v10, %v35_v9  ;;  %v47_v15 = vld [vmem:[%s693_s0 + $0x70] sm:$0xff]  ;;  %s530_s28 = smov [#allocation3]   ;;  %s409_s10 = sshll.u32 %s701_s8, 4  ;;  %s410_s10 = int_to_ptr.hbm [resolvable:$true] %s409_s10 }
   0x8   :  { %109 = vmatpush.bf16.msra.mxu0 %v476_v2  ;;  %484 = vmatpush.bf16.msra.mxu2 %v476_v2  ;;  %v53_v14 = vpack.c.bf16 %v42_v12, %v41_v11  ;;  %v48_v16 = vld [vmem:[%s693_s0 + $0x78] sm:$0xff]  ;;  %v37_v18 = vld [vmem:[%s693_s0 + $0x20] sm:$0xff]  ;;  %v38_v19 = vld [vmem:[%s693_s0 + $0x28] sm:$0xff]  ;;  %s407_s29 = sshll.u32 %s530_s28, 4  ;;  %s408_s29 = int_to_ptr.vmem [resolvable:$true] %s407_s29 }
   0x9   :  { %485 = vmatpush.bf16.msra.mxu3 %v476_v2  ;;  %v56_v17 = vpack.c.bf16 %v48_v16, %v47_v15  ;;  %v43_v20 = vld [vmem:[%s693_s0 + $0x50] sm:$0xff]  ;;  %v44_v21 = vld [vmem:[%s693_s0 + $0x58] sm:$0xff]  ;;  %v51_v22 = vpack.c.bf16 %v38_v19, %v37_v18  ;;  %v45_v24 = vld [vmem:[%s693_s0 + $0x60] sm:$0xff] }
   0xa   :  { %v54_v23 = vpack.c.bf16 %v44_v21, %v43_v20  ;;  %v46_v25 = vld [vmem:[%s693_s0 + $0x68] sm:$0xff]  ;;  %v481_v27 = vld [vmem:[%s697_s4 + $0x18] sm:$0xff]  ;;  %v480_v28 = vld [vmem:[%s697_s4 + $0x10] sm:$0xff] }
   0xb   :  { %426 = vmatmul.msk.bf16.vlgmr.msra.gmra.mxu0 %vm77_vm0, %v49_v7  ;;  %429 = vmatmul.msk.bf16.vlgmr.msra.gmra.mxu2 %vm77_vm0, %v52_v8  ;;  %v55_v26 = vpack.c.bf16 %v46_v25, %v45_v24  ;;  %v479_v29 = vld [vmem:[%s697_s4 + $0x8] sm:$0xff]  ;;  %v478_v30 = vld [vmem:[%s697_s4] sm:$0xff] }
   0xc   :  { %433 = vmatmul.msk.bf16.vlgmr.msra.gmra.mxu3 %vm77_vm0, %v56_v17  ;;  %486 = vmatpush.bf16.msra.mxu1 %v481_v27  ;;  %v497_v32 = vld [vmem:[%s696_s3] ss:$0 sm:$0xff] }
   0xd   :  { %240 = vmatpush.bf16.msrb.mxu0 %v481_v27  ;;  %487 = vmatpush.bf16.msrb.mxu3 %v481_v27 }
  0x10   :  { %488 = vmatpush.bf16.msra.mxu1 %v480_v28 }
  0x11   :  { %241 = vmatpush.bf16.msrb.mxu0 %v480_v28  ;;  %489 = vmatpush.bf16.msrb.mxu3 %v480_v28 }
  0x14   :  { %490 = vmatpush.bf16.msra.mxu1 %v479_v29 }
  0x15   :  { %242 = vmatpush.bf16.msrb.mxu0 %v479_v29  ;;  %491 = vmatpush.bf16.msrb.mxu3 %v479_v29 }
  0x18   :  { %492 = vmatpush.bf16.msra.mxu1 %v478_v30 }
  0x19   :  { %243 = vmatpush.bf16.msrb.mxu0 %v478_v30  ;;  %493 = vmatpush.bf16.msrb.mxu3 %v478_v30 }
  0x1b   :  { %427 = vmatmul.msk.bf16.gmra.mxu0 %vm77_vm0, %v50_v13  ;;  %430 = vmatmul.msk.bf16.gmra.mxu2 %vm77_vm0, %v53_v14 }
  0x2b   :  { %428 = vmatmul.msk.bf16.gmra.mxu0 %vm77_vm0, %v51_v22  ;;  %431 = vmatmul.msk.bf16.gmra.mxu2 %vm77_vm0, %v54_v23 }
  0x3b   :  { %432 = vmatmul.msk.bf16.gmra.mxu2 %vm77_vm0, %v55_v26 }
  0x88   :  { %v111_v31 = vpop.f32.mrf.mxu0 }
  0x89   :  { %v112_v33 = vadd.f32 %v497_v32, %v111_v31 }
  0x8b   :  { %v151_v36 = vmax.f32 %v112_v33, 0.0 }
  0x8e   :  { %v126_v34 = vpop.f32.mrf.mxu2 }
  0x8f   :  { %v127_v2 = vadd.f32 %v497_v32, %v126_v34  ;;  %v146_v8 = vpop.f32.mrf.mxu3 }
  0x90   :  { %v113_v35 = vpop.f32.mrf.mxu0  ;;  %v147_v18 = vadd.f32 %v497_v32, %v146_v8 }
  0x91   :  { %v114_v37 = vadd.f32 %v497_v32, %v113_v35  ;;  %v157_v4 = vmax.f32 %v127_v2, 0.0 }
  0x92   :  { %v165_v21 = vmax.f32 %v147_v18, 0.0 }
  0x93   :  { %v152_v38 = vmax.f32 %v114_v37, 0.0 }
  0x95   :  { %v167_v39 = vpack.c.bf16 %v152_v38, %v151_v36 }
  0x96   :  { %v128_v40 = vpop.f32.mrf.mxu2 }
  0x97   :  { %450 = vmatmul.msk.bf16.vlgmr.msrb.gmra.mxu0 %vm211_vm1, %v167_v39  ;;  %v129_v0 = vadd.f32 %v497_v32, %v128_v40  ;;  %v148_v15 = vpop.f32.mrf.mxu3 }
  0x98   :  { %v116_v41 = vpop.f32.mrf.mxu0  ;;  %v149_v19 = vadd.f32 %v497_v32, %v148_v15 }
  0x99   :  { %v117_v42 = vadd.f32 %v497_v32, %v116_v41  ;;  %v158_v3 = vmax.f32 %v129_v0, 0.0 }
  0x9a   :  { %v166_v22 = vmax.f32 %v149_v19, 0.0 }
  0x9b   :  { %v153_v45 = vmax.f32 %v117_v42, 0.0  ;;  %v170_v5 = vpack.c.bf16 %v158_v3, %v157_v4 }
  0x9c   :  { %v174_v23 = vpack.c.bf16 %v166_v22, %v165_v21 }
  0x9e   :  { %v131_v43 = vpop.f32.mrf.mxu2 }
  0x9f   :  { %v132_v14 = vadd.f32 %v497_v32, %v131_v43 }
  0xa0   :  { %v118_v44 = vpop.f32.mrf.mxu0 }
  0xa1   :  { %v119_v46 = vadd.f32 %v497_v32, %v118_v44  ;;  %v159_v17 = vmax.f32 %v132_v14, 0.0 }
  0xa3   :  { %v154_v47 = vmax.f32 %v119_v46, 0.0 }
  0xa5   :  { %v168_v48 = vpack.c.bf16 %v154_v47, %v153_v45 }
  0xa6   :  { %v133_v49 = vpop.f32.mrf.mxu2 }
  0xa7   :  { %451 = vmatmul.msk.bf16.vlgmr.msra.gmra.mxu1 %vm211_vm1, %v168_v48  ;;  %v134_v13 = vadd.f32 %v497_v32, %v133_v49 }
  0xa8   :  { %v121_v50 = vpop.f32.mrf.mxu0 }
  0xa9   :  { %v122_v51 = vadd.f32 %v497_v32, %v121_v50  ;;  %v160_v16 = vmax.f32 %v134_v13, 0.0 }
  0xab   :  { %v155_v54 = vmax.f32 %v122_v51, 0.0  ;;  %v171_v20 = vpack.c.bf16 %v160_v16, %v159_v17 }
  0xae   :  { %v136_v52 = vpop.f32.mrf.mxu2 }
  0xaf   :  { %v137_v57 = vadd.f32 %v497_v32, %v136_v52 }
  0xb0   :  { %v123_v53 = vpop.f32.mrf.mxu0 }
  0xb1   :  { %v124_v55 = vadd.f32 %v497_v32, %v123_v53  ;;  %v161_v61 = vmax.f32 %v137_v57, 0.0 }
  0xb3   :  { %v156_v56 = vmax.f32 %v124_v55, 0.0 }
  0xb5   :  { %v169_v58 = vpack.c.bf16 %v156_v56, %v155_v54 }
  0xb6   :  { %v138_v59 = vpop.f32.mrf.mxu2 }
  0xb7   :  { %v139_v60 = vadd.f32 %v497_v32, %v138_v59  ;;  %452 = vmatmul.msk.bf16.gmra.mxu1 %vm211_vm1, %v169_v58  ;;  %v302_v58 = vld [vmem:[#allocation2] sm:$0x1]  ;;  %v529_v59 = vmov 0  }
  0xb8   :  { %496 = vset.pattern.permute.xlu0 %v529_v59 }
  0xb9   :  { %v162_v62 = vmax.f32 %v139_v60, 0.0  ;;  %305 = vperm.xlu0 %496, %v302_v58  }
  0xbb   :  { %v172_v63 = vpack.c.bf16 %v162_v62, %v161_v61 }
  0xbd   :  { %455 = vmatmul.msk.bf16.vlgmr.msrb.gmra.mxu3 %vm211_vm1, %v172_v63 }
  0xbe   :  { %v141_v1 = vpop.f32.mrf.mxu2 }
  0xbf   :  { %v142_v6 = vadd.f32 %v497_v32, %v141_v1 }
  0xc1   :  { %v163_v10 = vmax.f32 %v142_v6, 0.0 }
  0xc6   :  { %v143_v7 = vpop.f32.mrf.mxu2 }
  0xc7   :  { %v144_v9 = vadd.f32 %v497_v32, %v143_v7  ;;  %453 = vmatmul.msk.bf16.gmra.mxu1 %vm211_vm1, %v170_v5  ;;  %v498_v32 = vld [vmem:[%s698_s5] ss:$0 sm:$0xff] }
  0xc9   :  { %v164_v11 = vmax.f32 %v144_v9, 0.0 }
  0xcb   :  { %v173_v12 = vpack.c.bf16 %v164_v11, %v163_v10  ;;  %v301_v11 = vld [vmem:[%s699_s6] sm:$0x1] }
  0xcd   :  { %456 = vmatmul.msk.bf16.gmra.mxu3 %vm211_vm1, %v173_v12 }
  0xd7   :  { %454 = vmatmul.msk.bf16.gmra.mxu1 %vm211_vm1, %v171_v20 }
  0xdd   :  { %457 = vmatmul.msk.bf16.gmra.mxu3 %vm211_vm1, %v174_v23 }
 0x114   :  { %v245_v62 = vpop.f32.mrf.mxu0 }
 0x115   :  { %v246_v8 = vadd.f32 %v498_v32, %v245_v62 }
 0x117   :  { %v285_v10 = vmax.f32 %v246_v8, 0.0 }
 0x11c   :  { %v247_v5 = vpop.f32.mrf.mxu0 }
 0x11d   :  { %v248_v7 = vadd.f32 %v498_v32, %v247_v5 }
 0x11f   :  { %v286_v9 = vmax.f32 %v248_v7, 0.0 }
 0x124   :  { %v250_v24 = vpop.f32.mrf.mxu1 }
 0x125   :  { %v251_v3 = vadd.f32 %v498_v32, %v250_v24 }
 0x127   :  { %v287_v6 = vmax.f32 %v251_v3, 0.0 }
 0x12b   :  { %v306_v12 = vpop.permute.xlu0 %305 }
 0x12c   :  { %v252_v25 = vpop.f32.mrf.mxu1  ;;  %v308_v13 = vperm.slane %v306_v12, 0 }
 0x12d   :  { %v253_v1 = vadd.f32 %v498_v32, %v252_v25 }
 0x12f   :  { %v288_v4 = vmax.f32 %v253_v1, 0.0 }
 0x134   :  { %v255_v28 = vpop.f32.mrf.mxu1 }
 0x135   :  { %v256_v63 = vadd.f32 %v498_v32, %v255_v28 }
 0x137   :  { %v289_v2 = vmax.f32 %v256_v63, 0.0 }
 0x13c   :  { %v257_v30 = vpop.f32.mrf.mxu1 }
 0x13d   :  { %v258_v60 = vadd.f32 %v498_v32, %v257_v30 }
 0x13f   :  { %v290_v0 = vmax.f32 %v258_v60, 0.0 }
 0x140   :  { %v270_v26 = vpop.f32.mrf.mxu3 }
 0x141   :  { %v271_v47 = vadd.f32 %v498_v32, %v270_v26 }
 0x143   :  { %v295_v50 = vmax.f32 %v271_v47, 0.0 }
 0x144   :  { %v260_v33 = vpop.f32.mrf.mxu1 }
 0x145   :  { %v261_v56 = vadd.f32 %v498_v32, %v260_v33 }
 0x147   :  { %v291_v61 = vmax.f32 %v261_v56, 0.0 }
 0x148   :  { %v272_v27 = vpop.f32.mrf.mxu3 }
 0x149   :  { %v273_v45 = vadd.f32 %v498_v32, %v272_v27  ;;  %v399_v27 = vld [vmem:[%s694_s1] sm:$0x1] }
 0x14b   :  { %v296_v48 = vmax.f32 %v273_v45, 0.0 }
 0x14c   :  { %v262_v35 = vpop.f32.mrf.mxu1 }
 0x14d   :  { %v263_v54 = vadd.f32 %v498_v32, %v262_v35 }
 0x14f   :  { %v292_v57 = vmax.f32 %v263_v54, 0.0 }
 0x150   :  { %v275_v29 = vpop.f32.mrf.mxu3 }
 0x151   :  { %v276_v43 = vadd.f32 %v498_v32, %v275_v29 }
 0x153   :  { %v297_v46 = vmax.f32 %v276_v43, 0.0 }
 0x154   :  { %v265_v42 = vpop.f32.mrf.mxu1 }
 0x155   :  { %v266_v52 = vadd.f32 %v498_v32, %v265_v42 }
 0x157   :  { %v293_v55 = vmax.f32 %v266_v52, 0.0 }
 0x158   :  { %v277_v31 = vpop.f32.mrf.mxu3 }
 0x159   :  { %v278_v40 = vadd.f32 %v498_v32, %v277_v31 }
 0x15b   :  { %v298_v44 = vmax.f32 %v278_v40, 0.0 }
 0x15c   :  { %v267_v49 = vpop.f32.mrf.mxu1 }
 0x15d   :  { %v268_v51 = vadd.f32 %v498_v32, %v267_v49 }
 0x15f   :  { %v294_v53 = vmax.f32 %v268_v51, 0.0 }
 0x160   :  { %v280_v34 = vpop.f32.mrf.mxu3 }
 0x161   :  { %v281_v38 = vadd.f32 %v498_v32, %v280_v34 }
 0x163   :  { %v299_v41 = vmax.f32 %v281_v38, 0.0 }
 0x168   :  { %v282_v36 = vpop.f32.mrf.mxu3 }
 0x169   :  { %v283_v37 = vadd.f32 %v498_v32, %v282_v36 }
 0x16b   :  { %v300_v39 = vmax.f32 %v283_v37, 0.0 }
 0x16d   :  { %458 = vmatpush.xpose.msk.msrb.mxu2 %vm77_vm0, %v300_v39 }
 0x171   :  { %459 = vmatpush.xpose.msk.msrb.mxu2 %vm77_vm0, %v299_v41 }
 0x175   :  { %460 = vmatpush.xpose.msk.msrb.mxu2 %vm77_vm0, %v298_v44 }
 0x179   :  { %461 = vmatpush.xpose.msk.msrb.mxu2 %vm77_vm0, %v297_v46 }
 0x17d   :  { %462 = vmatpush.xpose.msk.msrb.mxu2 %vm77_vm0, %v296_v48 }
 0x181   :  { %463 = vmatpush.xpose.msk.msrb.mxu2 %vm77_vm0, %v295_v50 }
 0x185   :  { %464 = vmatpush.xpose.msk.msrb.mxu2 %vm77_vm0, %v294_v53 }
 0x189   :  { %465 = vmatpush.xpose.msk.msrb.mxu2 %vm77_vm0, %v293_v55 }
 0x18d   :  { %466 = vmatpush.xpose.msk.msrb.mxu2 %vm77_vm0, %v292_v57 }
 0x191   :  { %467 = vmatpush.xpose.msk.msrb.mxu2 %vm77_vm0, %v291_v61 }
 0x195   :  { %468 = vmatpush.xpose.msk.msrb.mxu2 %vm77_vm0, %v290_v0 }
 0x199   :  { %469 = vmatpush.xpose.msk.msrb.mxu2 %vm77_vm0, %v289_v2 }
 0x19d   :  { %470 = vmatpush.xpose.msk.msrb.mxu2 %vm77_vm0, %v288_v4 }
 0x1a1   :  { %471 = vmatpush.xpose.msk.msrb.mxu2 %vm77_vm0, %v287_v6 }
 0x1a5   :  { %472 = vmatpush.xpose.msk.msrb.mxu2 %vm77_vm0, %v286_v9 }
 0x1a9   :  { %473 = vmatpush.xpose.msk.msrb.mxu2 %vm77_vm0, %v285_v10 }
 0x1ac   :  { %474 = vmatmul.msk.f32.vlgmr.msrb.gmra.mxu2 %vm77_vm0, %v301_v11 }
 0x22f   :  { %v377_v14 = vpop.f32.mrf.mxu2 }
 0x230   :  { %v378_v15 = vadd.f32 %v377_v14, %v308_v13 }
 0x232   :  { %v475_v16 = vmul.f32 -1.442695, %v378_v15 }
 0x234   :  { %499 = vpow2.f32 %v475_v16 }
 0x23a   :  { %v500_v17 = vpop.eup %499 }
 0x23b   :  { %v383_v18 = vadd.f32 1.0, %v500_v17 }
 0x23d   :  { %501 = vrcp.f32 %v383_v18  ;;  %v395_v22 = vand.u32 2147483648, %v383_v18  ;;  %v393_v24 = vand.u32 2147483647, %v383_v18  ;;  %vm389_vm3 = vweird.f32 %v383_v18 }
 0x23f   :  { %v396_v26 = vor.u32 1.1754944e-38, %v395_v22  ;;  %vm394_vm5 = vcmp.eq.f32.partialorder %v393_v24, 8.507059e+37 }
 0x243   :  { %v502_v19 = vpop.eup %501 }
 0x244   :  { %v385_v20 = vmul.f32 %v502_v19, %v383_v18  ;;  %vm390_vm2 = vweird.f32 %v502_v19 }
 0x245   :  { %vm391_vm4 = vmor %vm389_vm3, %vm390_vm2 }
 0x246   :  { %v386_v21 = vsub.f32 1.0, %v385_v20 }
 0x248   :  { %v387_v23 = vmul.f32 %v502_v19, %v386_v21 }
 0x24a   :  { %v388_v25 = vadd.f32 %v502_v19, %v387_v23 }
 0x24c   :  { %v392_v28 = vsel %vm391_vm4, %v502_v19, %v388_v25 }
 0x24d   :  { %v397_v29 = vsel %vm394_vm5, %v396_v26, %v392_v28 }
 0x24e   :  { %v400_v30 = vmul.f32 %v399_v27, %v397_v29 }
 0x250   :  { %401 = vst [vmem:[#allocation3] sm:$0x1] %v400_v30 }
 0x251   :  { %412 = dma.vmem_to_hbm [thread:$0]  %s408_s29, 16, %s410_s10, [#allocation4]  }
 0x252   :  { %527 = dma.done.wait [#allocation4], 16  }
 0x253   :  { %528 = vsyncadd [#allocation4], 4294967280 }
 0x254   :  { %417 = vsyncpa [#allocation4], 1 }

</bundles_post_ra>
